<compile_context>
chip_gen: v7x
topology: tpu7x:2x2x1
jax: 0.10.0
libtpu: 0.0.40
codegen_flags: <defaults>
</compile_context>

<pallas_src>
import jax
import jax.numpy as jnp
from jax import lax
from jax.experimental import pallas as pl
from jax.experimental.pallas import tpu as pltpu


def _loss_sum_jax(a, b):
    """Pure-JAX sum of per-element smooth-L1 losses (tail epilogue / tiny fallback)."""
    z = (a - b).astype(jnp.float32)
    az = jnp.abs(z)
    t = jnp.minimum(az, 0.01)
    return jnp.sum(t * (az - 0.5 * t))


def _make_kernel(*, k, nblocks, rows, tm, lane, chunk, n_chunks,
                 needs_step_gate, needs_row_mask):
    def kernel(x_ref, y_ref, out_ref):
        ki = pl.program_id(1)
        blk = pl.program_id(0) * k + ki

        # Zero the VMEM-resident accumulator tile on the first reduction step.
        @pl.when(ki == 0)
        def _init():
            out_ref[...] = jnp.zeros_like(out_ref)

        def accumulate():
            if needs_row_mask:
                # Hoisted out of the chunk loop (JAX does not CSE broadcasts).
                sub_iota = lax.broadcasted_iota(jnp.int32, (chunk, lane), 0)
                row0 = blk * tm

            def body(c, acc):
                start = pl.multiple_of(c * chunk, 8)
                xc = x_ref[pl.ds(start, chunk), :]
                yc = y_ref[pl.ds(start, chunk), :]
                z = (xc - yc).astype(jnp.float32)
                az = jnp.abs(z)
                # t = min(|z|, .01);  t*(|z| - .5*t) == 0.5*z^2  (|z| <  .01)
                #                                   == .01*(|z| - .005) otherwise
                t = jnp.minimum(az, 0.01)
                loss = t * (az - 0.5 * t)
                if needs_row_mask:
                    # Select (not multiply) so garbage/NaN in the partial edge
                    # block cannot leak into the accumulator.
                    valid = (row0 + start + sub_iota) < rows
                    loss = jnp.where(valid, loss, 0.0)
                # Per-lane fold of sublane row-groups of 8 (pure VALU adds); the
                # single cross-lane reduce happens once, in the wrapper.
                return acc + jnp.sum(loss.reshape(chunk // 8, 8, lane), axis=0)

            acc = lax.fori_loop(0, n_chunks, body,
                                jnp.zeros((8, lane), jnp.float32), unroll=True)
            out_ref[...] += acc

        if needs_step_gate:
            # Wasted steps (odd nblocks with the 2-way parallel split) re-read the
            # clamped last block but do not accumulate.
            pl.when(blk < nblocks)(accumulate)
        else:
            accumulate()

    return kernel


def smooth_l1_loss(x, y, size_average=True):
    """Pallas TPU implementation of the SmoothL1Loss module forward."""
    assert x.shape == y.shape
    n = x.size                     # total element count (mean scale)
    orig_last = x.shape[-1]        # PyTorch reduction dim (sum scale)
    scale = (1.0 / n) if size_average else (1.0 / orig_last)

    xf = jnp.ravel(x)
    yf = jnp.ravel(y)

    # --- lane-dense layout, no padding copies --------------------------------
    lanes = (1024, 512, 256, 128)
    candidates = [l for l in lanes if n // l >= 8]
    if not candidates:
        # Tiny input: not worth a kernel launch.
        return _loss_sum_jax(xf, yf) * scale
    exact = [l for l in candidates if n % l == 0]
    lane = max(exact) if exact else max(candidates)

    rows = n // lane
    main = rows * lane
    tail = n - main

    tail_sum = jnp.float32(0.0)
    if tail:
        # < lane leftover elements: tiny pure-JAX epilogue instead of padding.
        tail_sum = _loss_sum_jax(xf[main:], yf[main:])
        xf = xf[:main]
        yf = yf[:main]

    x2d = xf.reshape(rows, lane)
    y2d = yf.reshape(rows, lane)

    # --- tile selection --------------------------------------------------------
    # ~4 MiB f32 per input block (2 inputs x 2 pipeline buffers = 16 MiB), rows per
    # block a power of two (>= 8) so the in-kernel chunking divides evenly.
    tm_cap = max(8, (1 << 20) // lane)
    tm = 8
    while tm * 2 <= min(tm_cap, rows):
        tm *= 2

    nblocks = (rows + tm - 1) // tm
    p = 2 if nblocks >= 2 else 1          # feed both TensorCores on v7x
    k = (nblocks + p - 1) // p            # reduction ("arbitrary") steps per slice

    needs_step_gate = (p * k != nblocks)  # odd nblocks with p=2
    needs_row_mask = (rows % tm != 0)     # partial edge block

    # ~1 MiB f32 chunk inside the kernel keeps VMEM/vreg pressure flat.
    chunk = min(tm, max(8, (1 << 18) // lane))
    n_chunks = tm // chunk

    last_blk = nblocks - 1
    if needs_step_gate:
        def in_map(pi, ki):
            return (jnp.minimum(pi * k + ki, last_blk), 0)
    else:
        def in_map(pi, ki):
            return (pi * k + ki, 0)

    kernel = _make_kernel(k=k, nblocks=nblocks, rows=rows, tm=tm, lane=lane,
                          chunk=chunk, n_chunks=n_chunks,
                          needs_step_gate=needs_step_gate,
                          needs_row_mask=needs_row_mask)

    partials = pl.pallas_call(
        kernel,
        out_shape=jax.ShapeDtypeStruct((p * 8, lane), jnp.float32),
        grid_spec=pltpu.PrefetchScalarGridSpec(
            num_scalar_prefetch=0,
            grid=(p, k),
            in_specs=[pl.BlockSpec((tm, lane), in_map),
                      pl.BlockSpec((tm, lane), in_map)],
            # Same output block across the reduction axis -> resident accumulator.
            out_specs=pl.BlockSpec((8, lane), lambda pi, ki: (pi, 0)),
        ),
        compiler_params=pltpu.CompilerParams(
            dimension_semantics=("parallel", "arbitrary"),
            vmem_limit_bytes=48 << 20,
        ),
    )(x2d, y2d)

    total = jnp.sum(partials) + tail_sum
    return total * scale


def _reference(x, y, size_average=True):
    z = (x - y).astype(jnp.float32)
    az = jnp.abs(z)
    mse_mask = (az < 0.01).astype(jnp.float32)
    l1_mask = (az >= 0.01).astype(jnp.float32)
    mse = mse_mask * z
    l1 = l1_mask * z
    per_row = (jnp.mean(0.5 * mse * mse * mse_mask, axis=-1)
               + jnp.mean(0.01 * (jnp.abs(l1) - 0.005) * l1_mask, axis=-1))
    return jnp.mean(per_row) if size_average else jnp.sum(per_row)


if __name__ == "__main__":
    key = jax.random.PRNGKey(0)
    kx, ky, k2x, k2y = jax.random.split(key, 4)

    # NCHW inputs; differences straddle the 0.01 threshold so both branches of the
    # piecewise loss are exercised.  n = 2048 is a multiple of 128 -> zero-copy path.
    shape = (2, 4, 16, 16)
    x = jax.random.normal(kx, shape, dtype=jnp.float32) * 0.02
    y = jax.random.normal(ky, shape, dtype=jnp.float32) * 0.02

    out_mean = jax.block_until_ready(smooth_l1_loss(x, y, size_average=True))
    ref_mean = jax.block_until_ready(_reference(x, y, size_average=True))
    assert jnp.allclose(out_mean, ref_mean, rtol=2e-5, atol=1e-8), (out_mean, ref_mean)

    out_sum = jax.block_until_ready(smooth_l1_loss(x, y, size_average=False))
    ref_sum = jax.block_until_ready(_reference(x, y, size_average=False))
    assert jnp.allclose(out_sum, ref_sum, rtol=2e-5, atol=1e-8), (out_sum, ref_sum)

    # Awkward shape (n = 1155): exercises the partial-edge-block mask, the 2-way
    # parallel axis, and the pure-JAX tail epilogue.
    shape2 = (3, 5, 7, 11)
    x2 = jax.random.normal(k2x, shape2, dtype=jnp.float32) * 0.02
    y2 = jax.random.normal(k2y, shape2, dtype=jnp.float32) * 0.02
    out2 = jax.block_until_ready(smooth_l1_loss(x2, y2, size_average=True))
    ref2 = jax.block_until_ready(_reference(x2, y2, size_average=True))
    assert jnp.allclose(out2, ref2, rtol=2e-5, atol=1e-8), (out2, ref2)

    print("KERNEL_OK")
</pallas_src>

<mosaic_0001>
module attributes {stable_mosaic.version = 11 : i64} {
  func.func @kernel(%arg0: i32, %arg1: i32, %arg2: memref<8x256xf32, #tpu.memory_space<vmem>>, %arg3: memref<8x256xf32, #tpu.memory_space<vmem>>, %arg4: memref<8x256xf32, #tpu.memory_space<vmem>>) attributes {dimension_semantics = [#tpu.dimension_semantics<parallel>, #tpu.dimension_semantics<arbitrary>], iteration_bounds = array<i64: 1, 1>, scalar_prefetch = 0 : i64, scratch_operands = 0 : i64, tpu.core_type = #tpu.core_type<tc>, window_params = [{transform_indices = @transform_0, window_bounds = array<i64: 8, 256>}, {transform_indices = @transform_1, window_bounds = array<i64: 8, 256>}, {transform_indices = @transform_2, window_bounds = array<i64: 8, 256>}]} {
    %c0_i32 = arith.constant 0 : i32
    %0 = arith.cmpi eq, %arg1, %c0_i32 : i32
    %1 = arith.extui %0 : i1 to i32
    %c0_i32_0 = arith.constant 0 : i32
    %2 = arith.cmpi ne, %1, %c0_i32_0 : i32
    scf.if %2 {
      %cst_10 = arith.constant 0.000000e+00 : f32
      %24 = vector.broadcast %cst_10 : f32 to vector<8x256xf32>
      %c0_11 = arith.constant 0 : index
      %c0_12 = arith.constant 0 : index
      %25 = vector.load %arg4[%c0_11, %c0_12] : memref<8x256xf32, #tpu.memory_space<vmem>>, vector<8x256xf32>
      tpu.vector_store %arg4[%c0_11, %c0_12], %24 {strides = array<i32>} : memref<8x256xf32, #tpu.memory_space<vmem>>, vector<8x256xf32>,
    } else {
    }
    %cst = arith.constant 0.000000e+00 : f32
    %3 = vector.broadcast %cst : f32 to vector<8x256xf32>
    %c0_i32_1 = arith.constant 0 : i32
    %c8_i32 = arith.constant 8 : i32
    %4 = arith.muli %c0_i32_1, %c8_i32 : i32
    %5 = tpu.assume_multiple %4, 8 : i32
    %6 = arith.index_cast %5 : i32 to index
    %c0 = arith.constant 0 : index
    %7 = vector.load %arg2[%6, %c0] : memref<8x256xf32, #tpu.memory_space<vmem>>, vector<8x256xf32>
    %8 = arith.index_cast %5 : i32 to index
    %c0_2 = arith.constant 0 : index
    %9 = vector.load %arg3[%8, %c0_2] : memref<8x256xf32, #tpu.memory_space<vmem>>, vector<8x256xf32>
    %10 = arith.subf %7, %9 : vector<8x256xf32>
    %11 = math.absf %10 : vector<8x256xf32>
    %cst_3 = arith.constant 0.00999999977 : f32
    %12 = vector.broadcast %cst_3 : f32 to vector<8x256xf32>
    %13 = arith.minimumf %11, %12 : vector<8x256xf32>
    %cst_4 = arith.constant 5.000000e-01 : f32
    %14 = vector.broadcast %cst_4 : f32 to vector<8x256xf32>
    %15 = arith.mulf %14, %13 : vector<8x256xf32>
    %16 = arith.subf %11, %15 : vector<8x256xf32>
    %17 = arith.mulf %13, %16 : vector<8x256xf32>
    %18 = vector.shape_cast %17 : vector<8x256xf32> to vector<1x8x256xf32>
    %cst_5 = arith.constant dense<0.000000e+00> : vector<8x256xf32>
    %19 = vector.multi_reduction <add>, %18, %cst_5 [0] : vector<1x8x256xf32> to vector<8x256xf32>
    %20 = arith.addf %3, %19 : vector<8x256xf32>
    %c1_i32 = arith.constant 1 : i32
    %c0_6 = arith.constant 0 : index
    %c0_7 = arith.constant 0 : index
    %21 = vector.load %arg4[%c0_6, %c0_7] : memref<8x256xf32, #tpu.memory_space<vmem>>, vector<8x256xf32>
    %22 = arith.addf %21, %20 : vector<8x256xf32>
    %c0_8 = arith.constant 0 : index
    %c0_9 = arith.constant 0 : index
    %23 = vector.load %arg4[%c0_8, %c0_9] : memref<8x256xf32, #tpu.memory_space<vmem>>, vector<8x256xf32>
    tpu.vector_store %arg4[%c0_8, %c0_9], %22 {strides = array<i32>} : memref<8x256xf32, #tpu.memory_space<vmem>>, vector<8x256xf32>,
    return
  }
  func.func @transform_0(%arg0: i32, %arg1: i32) -> (i32, i32) {
    %c1_i32 = arith.constant 1 : i32
    %0 = arith.muli %arg0, %c1_i32 : i32
    %1 = arith.addi %0, %arg1 : i32
    %c0_i32 = arith.constant 0 : i32
    %c0_i32_0 = arith.constant 0 : i32
    return %1, %c0_i32 : i32, i32
  }
  func.func @transform_1(%arg0: i32, %arg1: i32) -> (i32, i32) {
    %c1_i32 = arith.constant 1 : i32
    %0 = arith.muli %arg0, %c1_i32 : i32
    %1 = arith.addi %0, %arg1 : i32
    %c0_i32 = arith.constant 0 : i32
    %c0_i32_0 = arith.constant 0 : i32
    return %1, %c0_i32 : i32, i32
  }
  func.func @transform_2(%arg0: i32, %arg1: i32) -> (i32, i32) {
    %c0_i32 = arith.constant 0 : i32
    %c0_i32_0 = arith.constant 0 : i32
    return %arg0, %c0_i32 : i32, i32
  }
}

</mosaic_0001>

<bundles_post_ra>
// kernel: tpu_custom_call.1
= control target key start
LH: loop header
LB: loop body
LE: loop exit
PB: predicated region body
PF: predicated region fallthrough
CT: control target
= control target key end

     0   :  { %7 = vsyncpa [#allocation3], 0  ;;  %s229_s0 = inlined_call_operand.hbm [shape: f32[8,256], index: 0, kind: input, shape index: {}]   ;;  %s230_s1 = inlined_call_operand.hbm [shape: f32[8,256], index: 1, kind: input, shape index: {}]   ;;  %s231_s2 = inlined_call_operand.hbm [shape: f32[8,256], index: 2, kind: output, shape index: {}]  }
   0x1   :  { %8 = vsyncpa [#allocation6], 0 }
   0x2   :  { %9 = vsyncpa [#allocation4], 0  ;;  %s175_s9 = smov [#allocation2]   ;;  %s176_s11 = smov [#allocation5]  }
   0x3   :  { %s20_s10 = sshll.u32 %s175_s9, 4  ;;  %s34_s12 = sshll.u32 %s176_s11, 4  ;;  %s21_s10 = int_to_ptr.vmem [resolvable:$true] %s20_s10  ;;  %s35_s12 = int_to_ptr.vmem [resolvable:$true] %s34_s12 }
   0x4   :  { %s103_s15 = scalar_lea.hbm %s229_s0, 256 }
   0x5   :  { %p104_p0 = scmp.ne.s32.totalorder %s229_s0, %s103_s15  ;;  %p107_p1 = scmp.lt.u32.totalorder %s103_s15, %s229_s0 }
   0x7   :  { %p109_p2 = pnand %p107_p1, %p104_p0 }
   0x9   :  { %112 = shalt.err (!%p109_p2)
}
   0xa   :  { %s113_s20 = scalar_lea.vmem %s21_s10, 256  ;;  %p118_p4 = scmp.lt.s32.totalorder %s21_s10, %s21_s10 }
   0xb   :  { %p114_p3 = scmp.ne.s32.totalorder %s21_s10, %s113_s20  ;;  %p119_p5 = scmp.lt.s32.totalorder %s113_s20, %s113_s20 }
   0xd   :  { %p120_p6 = por %p119_p5, %p118_p4 }
   0xf   :  { %p121_p7 = pnand %p120_p6, %p114_p3 }
  0x11   :  { %124 = shalt.err (!%p121_p7)
}
  0x12   :  { %23 = dma.hbm_to_vmem [thread:$0]  %s229_s0, 256, %s21_s10, [#allocation3]  }
  0x13   :  { %s125_s25 = scalar_lea.hbm %s230_s1, 256 }
  0x14   :  { %p126_p8 = scmp.ne.s32.totalorder %s230_s1, %s125_s25  ;;  %p129_p9 = scmp.lt.u32.totalorder %s125_s25, %s230_s1 }
  0x16   :  { %p131_p10 = pnand %p129_p9, %p126_p8 }
  0x18   :  { %134 = shalt.err (!%p131_p10)
}
  0x19   :  { %s135_s30 = scalar_lea.vmem %s35_s12, 256  ;;  %p140_p12 = scmp.lt.s32.totalorder %s35_s12, %s35_s12 }
  0x1a   :  { %p136_p11 = scmp.ne.s32.totalorder %s35_s12, %s135_s30  ;;  %p141_p13 = scmp.lt.s32.totalorder %s135_s30, %s135_s30 }
  0x1c   :  { %p142_p0 = por %p141_p13, %p140_p12 }
  0x1e   :  { %p143_p1 = pnand %p142_p0, %p136_p11 }
  0x20   :  { %146 = shalt.err (!%p143_p1)
}
  0x21   :  { %37 = dma.hbm_to_vmem [thread:$0]  %s230_s1, 256, %s35_s12, [#allocation6]  }
  0x22   :  { %169 = dma.done.wait [#allocation3], 256  }
  0x23   :  { %170 = vsyncadd [#allocation3], 4294967040 }
  0x24   :  { %171 = dma.done.wait [#allocation6], 256  }
  0x25   :  { %172 = vsyncadd [#allocation6], 4294967040  ;;  %v55_v0 = vld [vmem:[#allocation2] sm:$0xff]  ;;  %v59_v1 = vld [vmem:[#allocation5] sm:$0xff]  ;;  %s177_s1 = smov [#allocation7]  }
  0x26   :  { %v56_v2 = vld [vmem:[#allocation2 + $0x8] sm:$0xff]  ;;  %v61_v3 = vsub.f32 %v55_v0, %v59_v1  ;;  %v60_v4 = vld [vmem:[#allocation5 + $0x8] sm:$0xff]  ;;  %s89_s4 = sshll.u32 %s177_s1, 4  ;;  %s90_s4 = int_to_ptr.vmem [resolvable:$true] %s89_s4 }
  0x27   :  { %v62_v5 = vsub.f32 %v56_v2, %v60_v4  ;;  %s147_s5 = scalar_lea.vmem %s90_s4, 256  ;;  %p152_p3 = scmp.lt.s32.totalorder %s90_s4, %s90_s4 }
  0x28   :  { %v63_v6 = vand.u32 2147483647, %v61_v3  ;;  %p148_p2 = scmp.ne.s32.totalorder %s90_s4, %s147_s5  ;;  %p153_p4 = scmp.lt.s32.totalorder %s147_s5, %s147_s5 }
  0x29   :  { %v64_v7 = vand.u32 2147483647, %v62_v5 }
  0x2a   :  { %v65_v8 = vmin.f32 %v63_v6, 0.01  ;;  %p154_p5 = por %p153_p4, %p152_p3 }
  0x2b   :  { %v66_v9 = vmin.f32 %v64_v7, 0.01 }
  0x2c   :  { %v67_v10 = vmul.f32 0.5, %v65_v8  ;;  %p155_p6 = pnand %p154_p5, %p148_p2 }
  0x2d   :  { %v68_v11 = vmul.f32 0.5, %v66_v9 }
  0x2e   :  { %v69_v12 = vsub.f32 %v63_v6, %v67_v10 }
  0x2f   :  { %v70_v13 = vsub.f32 %v64_v7, %v68_v11 }
  0x30   :  { %v71_v14 = vmul.f32 %v69_v12, %v65_v8 }
  0x31   :  { %v72_v15 = vmul.f32 %v70_v13, %v66_v9 }
  0x32   :  { %81 = vst [vmem:[#allocation7] sm:$0xff] %v71_v14 }
  0x33   :  { %82 = vst [vmem:[#allocation7 + $0x8] sm:$0xff] %v72_v15 }
  0x34   :  { %158 = shalt.err (!%p155_p6)
}
  0x35   :  { %s159_s8 = scalar_lea.hbm %s231_s2, 256 }
  0x36   :  { %p160_p7 = scmp.ne.s32.totalorder %s231_s2, %s159_s8  ;;  %p163_p8 = scmp.lt.u32.totalorder %s159_s8, %s231_s2 }
  0x38   :  { %p165_p9 = pnand %p163_p8, %p160_p7 }
  0x3a   :  { %168 = shalt.err (!%p165_p9)
}
  0x3b   :  { %92 = dma.vmem_to_hbm [thread:$0]  %s90_s4, 256, %s231_s2, [#allocation4]  }
  0x3c   :  { %173 = dma.done.wait [#allocation4], 256  }
  0x3d   :  { %174 = vsyncadd [#allocation4], 4294967040 }
  0x3e   :  { %96 = vsyncpa [#allocation3], 1 }
  0x3f   :  { %97 = vsyncpa [#allocation6], 1 }
  0x40   :  { %98 = vsyncpa [#allocation4], 1 }

</bundles_post_ra>
